<compile_context>
chip_gen: v7x
topology: tpu7x:2x2x1
jax: 0.10.0
libtpu: 0.0.40
codegen_flags: <defaults>
</compile_context>

<pallas_src>
import functools
import math
from collections import namedtuple

import jax
import jax.numpy as jnp
from jax import lax
from jax.experimental import pallas as pl
from jax.experimental.pallas import tpu as pltpu


# (kernel_size, stride, padding) of the 4 conv layers in SignalEncoder
_LAYER_CFG = [(7, 4, 3), (5, 4, 2), (3, 2, 1), (3, 2, 1)]

_Dim = namedtuple("_Dim", "K s p G L_in L_out C_in C_out R")


def _layer_dims(c_in, length, params):
    dims = []
    c_prev, l_prev = c_in, length
    for (w, *_), (ksize, stride, pad) in zip(params, _LAYER_CFG):
        c_out = int(w.shape[0])
        l_out = (l_prev + 2 * pad - ksize) // stride + 1
        groups = -(-ksize // stride)                       # ceil(K / stride)
        dims.append(_Dim(ksize, stride, pad, groups, l_prev, l_out,
                         c_prev, c_out, l_out + groups - 1))
        c_prev, l_prev = c_out, l_out
    return tuple(dims)


# ------------------------------ fused kernel --------------------------------


def _encoder_kernel(*refs, dims, tb):
    """4x(Conv1d+BN+ReLU) + mean-pool for a tile of `tb` batch elements.

    refs = (x, w1, sh1, ..., w4, sh4, pool, out, A1, P2, A2, P3, A3, P4)
      x    : (tb*R1 + 1, s1*C_in)  bf16  packed, banded layer-1 input
      w_i  : (G_i, s_i*C_in_i, C_out_i) bf16 BN-folded, stride-to-depth packed
      sh_i : (1, C_out_i)          f32   folded BN shift
      pool : (tb, tb*R4)           f32   banded mean-pool matrix
      out  : (tb, C_out_4)         f32
      A_i  : f32 staging (unpacked, next-layer padded, banded) scratch
      P_i  : bf16 packed matmul-operand scratch for layer i
    """
    n = len(dims)
    x_ref = refs[0]
    w_refs = refs[1:1 + 2 * n:2]
    sh_refs = refs[2:2 + 2 * n:2]
    pool_ref = refs[1 + 2 * n]
    out_ref = refs[2 + 2 * n]
    a_refs = refs[3 + 2 * n::2]          # A1, A2, A3
    p_refs = refs[4 + 2 * n::2]          # P2, P3, P4

    def conv_bn_relu(src_ref, w_ref, sh_ref, m_rows, groups):
        c_out = w_ref.shape[-1]
        acc = jnp.zeros((m_rows, c_out), jnp.float32)
        # Stride-to-depth conv: G contiguous-tap slab matmuls (no strided taps
        # feeding the MXU), f32 accumulation, bf16 operands.
        for g in range(groups):
            acc = acc + jnp.dot(src_ref[pl.ds(g, m_rows), :], w_ref[g],
                                preferred_element_type=jnp.float32)
        # BN scale folded into w on the host -> epilogue is shift + ReLU only.
        return jnp.maximum(acc + sh_ref[...], 0.0)

    src = x_ref
    for i in range(n):
        d = dims[i]
        m_rows = tb * d.R
        h = conv_bn_relu(src, w_refs[i], sh_refs[i], m_rows, d.G)
        if i + 1 < n:
            nxt = dims[i + 1]
            a_ref, p_ref = a_refs[i], p_refs[i]
            c = d.C_out
            band = nxt.R * nxt.s                     # rows per band in staging
            n_store = min(d.L_out, band - nxt.p)     # rows past this are never read
            tail = band - nxt.p - n_store
            # Stage valid rows (junk band rows of `h` are dropped); zero the
            # conv-padding rows every step (safe under v7x 'parallel' sharding).
            for b in range(tb):
                base = b * band
                if nxt.p > 0:
                    a_ref[pl.ds(base, nxt.p), :] = jnp.zeros((nxt.p, c),
                                                             a_ref.dtype)
                a_ref[pl.ds(base + nxt.p, n_store), :] = lax.slice(
                    h, (b * d.R, 0), (b * d.R + n_store, c))
                if tail > 0:
                    a_ref[pl.ds(base + nxt.p + n_store, tail), :] = jnp.zeros(
                        (tail, c), a_ref.dtype)
            # Phase-split repack into the next layer's (rows, s*C) packed
            # operand buffer: s contiguous stores fed by strided f32 reads;
            # this is also where the single f32 -> bf16 cast happens.
            m_next = tb * nxt.R
            for ph in range(nxt.s):
                p_ref[pl.ds(0, m_next), ph * c:(ph + 1) * c] = (
                    a_ref[pl.ds(ph, m_next, stride=nxt.s), :].astype(p_ref.dtype))
            extra = nxt.G - 1                        # slab tail rows for tap g>0
            if extra > 0:
                p_ref[pl.ds(m_next, extra), :] = jnp.zeros(
                    (extra, nxt.s * c), p_ref.dtype)
            src = p_ref
        else:
            # fused AdaptiveAvgPool1d(1) + squeeze(-1): banded mean as one matmul
            out_ref[...] = jnp.dot(pool_ref[...], h,
                                   preferred_element_type=jnp.float32)


# ------------------------------ host wrapper ---------------------------------


def signal_encoder_forward(x, params, *, batch_tile=None, eps=1e-5):
    """x: (B, C_in, L) float32 (PyTorch NCL). Returns (B, base_channels*8) f32."""
    batch, c_in, length = x.shape
    assert len(params) == len(_LAYER_CFG)
    dims = _layer_dims(c_in, length, params)
    n = len(dims)
    c_last = dims[-1].C_out

    # Batch tile: amortize per-step overhead, but keep >= 2 grid steps when
    # B >= 2 so both v7x TensorCores get work.
    if batch_tile is None:
        batch_tile = max(1, min(16, batch // 2))
    tb = max(1, min(batch_tile, batch))
    n_tiles = pl.cdiv(batch, tb)
    b_pad = n_tiles * tb

    # ---- host prep: stride-to-depth pack the input, banded per batch tile ----
    d0 = dims[0]
    cap = d0.R * d0.s                       # packed positions per band
    keep = min(length, cap - d0.p)          # rows past `cap` are never read
    x_t = jnp.transpose(x, (0, 2, 1))[:, :keep, :]          # (B, L', C_in)
    x_t = jnp.pad(x_t, ((0, b_pad - batch), (d0.p, cap - d0.p - keep), (0, 0)))
    x_pk = x_t.reshape(b_pad, d0.R, d0.s * d0.C_in)
    x_pk = x_pk.reshape(n_tiles, tb * d0.R, d0.s * d0.C_in)
    x_pk = jnp.pad(x_pk, ((0, 0), (0, d0.G - 1), (0, 0))).astype(jnp.bfloat16)

    inputs = [x_pk]
    in_specs = [pl.BlockSpec((None,) + x_pk.shape[1:], lambda t: (t, 0, 0))]

    # ---- fold BN into conv weights; pack weights as (G, s*C_in, C_out) -------
    for (w, bias, gamma, beta, mean, var), d in zip(params, dims):
        inv_std = gamma * lax.rsqrt(var + eps)                # (C_out,)
        w_fold = w * inv_std[:, None, None]                   # (C_out, C_in, K)
        w_ext = jnp.pad(w_fold, ((0, 0), (0, 0), (0, d.G * d.s - d.K)))
        w_pk = jnp.transpose(w_ext, (2, 1, 0)).reshape(d.G, d.s * d.C_in, d.C_out)
        w_pk = w_pk.astype(jnp.bfloat16)
        shift = ((bias - mean) * inv_std + beta).reshape(1, d.C_out)
        shift = shift.astype(jnp.float32)
        inputs += [w_pk, shift]
        # Constant index_maps -> weights/shifts stay VMEM-resident across grid.
        in_specs += [pl.BlockSpec(w_pk.shape, lambda t: (0, 0, 0)),
                     pl.BlockSpec(shift.shape, lambda t: (0, 0))]

    # ---- constant pooling matrix: banded mean over the last layer's slab -----
    dn = dims[-1]
    m_last = tb * dn.R
    col = jnp.arange(m_last)[None, :]
    row = jnp.arange(tb)[:, None]
    valid = (col >= row * dn.R) & (col < row * dn.R + dn.L_out)
    pool = jnp.where(valid, 1.0 / dn.L_out, 0.0).astype(jnp.float32)
    inputs.append(pool)
    in_specs.append(pl.BlockSpec(pool.shape, lambda t: (0, 0)))

    # ---- VMEM scratch: f32 staging + bf16 packed operands per transition -----
    scratch_shapes = []
    scratch_bytes = 0
    for i in range(n - 1):
        d, nxt = dims[i], dims[i + 1]
        band = nxt.R * nxt.s
        scratch_shapes.append(pltpu.VMEM((tb * band, d.C_out), jnp.float32))
        scratch_shapes.append(
            pltpu.VMEM((tb * nxt.R + nxt.G - 1, nxt.s * d.C_out), jnp.bfloat16))
        scratch_bytes += tb * band * d.C_out * 4
        scratch_bytes += (tb * nxt.R + nxt.G - 1) * nxt.s * d.C_out * 2

    # ---- VMEM budget from the actual buffers (cap for v7x's 64 MiB VMEM) -----
    est = 2 * math.prod(x_pk.shape[1:]) * 2                   # dbl-buffered input
    est += sum(math.prod(a.shape) * jnp.dtype(a.dtype).itemsize
               for a in inputs[1:])                           # weights/shift/pool
    est += scratch_bytes
    est += sum(2 * tb * d.R * d.C_out * 4 for d in dims)      # f32 acc slabs
    est += 2 * tb * c_last * 4                                # output block
    vmem_limit = int(min(64 * 1024 * 1024, max(32 * 1024 * 1024, 2 * est)))

    kernel = functools.partial(_encoder_kernel, dims=dims, tb=tb)
    out = pl.pallas_call(
        kernel,
        out_shape=jax.ShapeDtypeStruct((n_tiles, tb, c_last), jnp.float32),
        grid=(n_tiles,),
        in_specs=in_specs,
        out_specs=pl.BlockSpec((None, tb, c_last), lambda t: (t, 0, 0)),
        scratch_shapes=scratch_shapes,
        compiler_params=pltpu.CompilerParams(
            dimension_semantics=("parallel",),     # megacore-shard batch tiles
            vmem_limit_bytes=vmem_limit,
        ),
    )(*inputs)
    return out.reshape(b_pad, c_last)[:batch]


# ------------------------------ synthetic params -----------------------------


def make_signal_encoder_params(key, in_channels, base_channels=32):
    """Deterministic synthetic parameters matching SignalEncoder.__init__ shapes."""
    chans = [in_channels, base_channels, base_channels * 2,
             base_channels * 4, base_channels * 8]
    params = []
    for i, (ksize, _, _) in enumerate(_LAYER_CFG):
        c_in, c_out = chans[i], chans[i + 1]
        key, kw, kb, kg, kbt, km, kv = jax.random.split(key, 7)
        w = jax.random.normal(kw, (c_out, c_in, ksize), jnp.float32) * 0.1
        b = jax.random.normal(kb, (c_out,), jnp.float32) * 0.1
        gamma = jax.random.uniform(kg, (c_out,), jnp.float32, 0.5, 1.5)
        beta = jax.random.normal(kbt, (c_out,), jnp.float32) * 0.1
        rmean = jax.random.normal(km, (c_out,), jnp.float32) * 0.1
        rvar = jax.random.uniform(kv, (c_out,), jnp.float32, 0.5, 1.5)
        params.append((w, b, gamma, beta, rmean, rvar))
    return params


# ------------------------------- pure-JAX ref ---------------------------------


def signal_encoder_reference(x, params, eps=1e-5):
    h = x
    for (w, b, g, bt, m, v), (k, s, p) in zip(params, _LAYER_CFG):
        h = lax.conv_general_dilated(
            h, w, window_strides=(s,), padding=[(p, p)],
            dimension_numbers=("NCH", "OIH", "NCH"))
        h = h + b[None, :, None]
        h = (g[None, :, None] * (h - m[None, :, None])
             / jnp.sqrt(v[None, :, None] + eps) + bt[None, :, None])
        h = jnp.maximum(h, 0.0)
    return jnp.mean(h, axis=-1)


# ----------------------------------- main -------------------------------------

if __name__ == "__main__":
    key = jax.random.PRNGKey(0)
    key_x, key_p = jax.random.split(key)

    # small shapes: batch=2, in_channels=4, length=256, base_channels=8
    B, C_IN, L, BASE = 2, 4, 256, 8
    x = jax.random.normal(key_x, (B, C_IN, L), jnp.float32)
    params = make_signal_encoder_params(key_p, C_IN, base_channels=BASE)

    forward = jax.jit(signal_encoder_forward)
    out = jax.block_until_ready(forward(x, params))
    ref = jax.block_until_ready(signal_encoder_reference(x, params))

    assert out.shape == (B, BASE * 8), out.shape
    # bf16 operands with f32 accumulation -> compare with a relative-L2 check.
    rel_err = float(jnp.linalg.norm(out - ref) / jnp.linalg.norm(ref))
    assert rel_err < 5e-2, rel_err

    print("KERNEL_OK")
</pallas_src>

<mosaic_0001>
module attributes {stable_mosaic.version = 11 : i64} {
  func.func @_encoder_kernel(%arg0: i32, %arg1: memref<1x66x16xbf16, #tpu.memory_space<vmem>>, %arg2: memref<2x16x8xbf16, #tpu.memory_space<vmem>>, %arg3: memref<1x8xf32, #tpu.memory_space<vmem>>, %arg4: memref<2x32x16xbf16, #tpu.memory_space<vmem>>, %arg5: memref<1x16xf32, #tpu.memory_space<vmem>>, %arg6: memref<2x32x32xbf16, #tpu.memory_space<vmem>>, %arg7: memref<1x32xf32, #tpu.memory_space<vmem>>, %arg8: memref<2x64x64xbf16, #tpu.memory_space<vmem>>, %arg9: memref<1x64xf32, #tpu.memory_space<vmem>>, %arg10: memref<1x5xf32, #tpu.memory_space<vmem>>, %arg11: memref<1x1x64xf32, #tpu.memory_space<vmem>>, %arg12: memref<68x8xf32, #tpu.memory_space<vmem>>, %arg13: memref<18x32xbf16, #tpu.memory_space<vmem>>, %arg14: memref<18x16xf32, #tpu.memory_space<vmem>>, %arg15: memref<10x32xbf16, #tpu.memory_space<vmem>>, %arg16: memref<10x32xf32, #tpu.memory_space<vmem>>, %arg17: memref<6x64xbf16, #tpu.memory_space<vmem>>) attributes {dimension_semantics = [#tpu.dimension_semantics<parallel>], iteration_bounds = array<i64: 2>, scalar_prefetch = 0 : i64, scratch_operands = 6 : i64, tpu.core_type = #tpu.core_type<tc>, window_params = [{transform_indices = @transform_0, window_bounds = array<i64: 1, 66, 16>}, {pipeline_mode = #tpu.pipeline_mode<synchronous>, transform_indices = @transform_1, window_bounds = array<i64: 2, 16, 8>}, {pipeline_mode = #tpu.pipeline_mode<synchronous>, transform_indices = @transform_2, window_bounds = array<i64: 1, 8>}, {pipeline_mode = #tpu.pipeline_mode<synchronous>, transform_indices = @transform_3, window_bounds = array<i64: 2, 32, 16>}, {pipeline_mode = #tpu.pipeline_mode<synchronous>, transform_indices = @transform_4, window_bounds = array<i64: 1, 16>}, {pipeline_mode = #tpu.pipeline_mode<synchronous>, transform_indices = @transform_5, window_bounds = array<i64: 2, 32, 32>}, {pipeline_mode = #tpu.pipeline_mode<synchronous>, transform_indices = @transform_6, window_bounds = array<i64: 1, 32>}, {pipeline_mode = #tpu.pipeline_mode<synchronous>, transform_indices = @transform_7, window_bounds = array<i64: 2, 64, 64>}, {pipeline_mode = #tpu.pipeline_mode<synchronous>, transform_indices = @transform_8, window_bounds = array<i64: 1, 64>}, {pipeline_mode = #tpu.pipeline_mode<synchronous>, transform_indices = @transform_9, window_bounds = array<i64: 1, 5>}, {transform_indices = @transform_10, window_bounds = array<i64: 1, 1, 64>}]} {
    %cst = arith.constant 0.000000e+00 : f32
    %0 = vector.broadcast %cst : f32 to vector<65x8xf32>
    %c0 = arith.constant 0 : index
    %c0_0 = arith.constant 0 : index
    %c0_1 = arith.constant 0 : index
    %1 = vector.load %arg1[%c0, %c0_0, %c0_1] : memref<1x66x16xbf16, #tpu.memory_space<vmem>>, vector<1x65x16xbf16>
    %2 = vector.shape_cast %1 : vector<1x65x16xbf16> to vector<65x16xbf16>
    %c0_2 = arith.constant 0 : index
    %c0_3 = arith.constant 0 : index
    %c0_4 = arith.constant 0 : index
    %3 = vector.load %arg2[%c0_2, %c0_3, %c0_4] : memref<2x16x8xbf16, #tpu.memory_space<vmem>>, vector<1x16x8xbf16>
    %4 = vector.shape_cast %3 : vector<1x16x8xbf16> to vector<16x8xbf16>
    %cst_5 = arith.constant dense<0.000000e+00> : vector<65x8xf32>
    %5 = tpu.matmul %2, %4, %cst_5 {dimension_numbers = #tpu.dot_dimension_numbers<[1], [0], [0], [1], [0, 0, 1, 1], [], []>} : vector<65x16xbf16>, vector<16x8xbf16>, vector<65x8xf32> -> vector<65x8xf32>
    %6 = arith.addf %0, %5 : vector<65x8xf32>
    %c0_6 = arith.constant 0 : index
    %c1 = arith.constant 1 : index
    %c0_7 = arith.constant 0 : index
    %7 = vector.load %arg1[%c0_6, %c1, %c0_7] : memref<1x66x16xbf16, #tpu.memory_space<vmem>>, vector<1x65x16xbf16>
    %8 = vector.shape_cast %7 : vector<1x65x16xbf16> to vector<65x16xbf16>
    %c1_8 = arith.constant 1 : index
    %c0_9 = arith.constant 0 : index
    %c0_10 = arith.constant 0 : index
    %9 = vector.load %arg2[%c1_8, %c0_9, %c0_10] : memref<2x16x8xbf16, #tpu.memory_space<vmem>>, vector<1x16x8xbf16>
    %10 = vector.shape_cast %9 : vector<1x16x8xbf16> to vector<16x8xbf16>
    %cst_11 = arith.constant dense<0.000000e+00> : vector<65x8xf32>
    %11 = tpu.matmul %8, %10, %cst_11 {dimension_numbers = #tpu.dot_dimension_numbers<[1], [0], [0], [1], [0, 0, 1, 1], [], []>} : vector<65x16xbf16>, vector<16x8xbf16>, vector<65x8xf32> -> vector<65x8xf32>
    %12 = arith.addf %6, %11 : vector<65x8xf32>
    %c0_12 = arith.constant 0 : index
    %c0_13 = arith.constant 0 : index
    %13 = vector.load %arg3[%c0_12, %c0_13] : memref<1x8xf32, #tpu.memory_space<vmem>>, vector<1x8xf32>
    %14 = vector.broadcast %13 : vector<1x8xf32> to vector<65x8xf32>
    %15 = arith.addf %12, %14 : vector<65x8xf32>
    %cst_14 = arith.constant 0.000000e+00 : f32
    %16 = vector.broadcast %cst_14 : f32 to vector<65x8xf32>
    %17 = arith.maximumf %15, %16 : vector<65x8xf32>
    %cst_15 = arith.constant 0.000000e+00 : f32
    %18 = vector.broadcast %cst_15 : f32 to vector<2x8xf32>
    %c0_16 = arith.constant 0 : index
    %c0_17 = arith.constant 0 : index
    %19 = vector.load %arg12[%c0_16, %c0_17] : memref<68x8xf32, #tpu.memory_space<vmem>>, vector<2x8xf32>
    tpu.vector_store %arg12[%c0_16, %c0_17], %18 {strides = array<i32>} : memref<68x8xf32, #tpu.memory_space<vmem>>, vector<2x8xf32>,
    %20 = vector.extract_strided_slice %17 {offsets = [0, 0], sizes = [64, 8], strides = [1, 1]} : vector<65x8xf32> to vector<64x8xf32>
    %c2 = arith.constant 2 : index
    %c0_18 = arith.constant 0 : index
    %21 = vector.load %arg12[%c2, %c0_18] : memref<68x8xf32, #tpu.memory_space<vmem>>, vector<64x8xf32>
    tpu.vector_store %arg12[%c2, %c0_18], %20 {strides = array<i32>} : memref<68x8xf32, #tpu.memory_space<vmem>>, vector<64x8xf32>,
    %cst_19 = arith.constant 0.000000e+00 : f32
    %22 = vector.broadcast %cst_19 : f32 to vector<2x8xf32>
    %c66 = arith.constant 66 : index
    %c0_20 = arith.constant 0 : index
    %23 = vector.load %arg12[%c66, %c0_20] : memref<68x8xf32, #tpu.memory_space<vmem>>, vector<2x8xf32>
    tpu.vector_store %arg12[%c66, %c0_20], %22 {strides = array<i32>} : memref<68x8xf32, #tpu.memory_space<vmem>>, vector<2x8xf32>,
    %c0_21 = arith.constant 0 : index
    %c0_22 = arith.constant 0 : index
    %24 = tpu.strided_load %arg12[%c0_21, %c0_22] {strides = array<i32: 4, 1>} : memref<68x8xf32, #tpu.memory_space<vmem>>, vector<17x8xf32>
    %25 = arith.truncf %24 : vector<17x8xf32> to vector<17x8xbf16>
    %c0_23 = arith.constant 0 : index
    %c0_24 = arith.constant 0 : index
    %26 = vector.load %arg13[%c0_23, %c0_24] : memref<18x32xbf16, #tpu.memory_space<vmem>>, vector<17x8xbf16>
    tpu.vector_store %arg13[%c0_23, %c0_24], %25 {strides = array<i32>} : memref<18x32xbf16, #tpu.memory_space<vmem>>, vector<17x8xbf16>,
    %c1_25 = arith.constant 1 : index
    %c0_26 = arith.constant 0 : index
    %27 = tpu.strided_load %arg12[%c1_25, %c0_26] {strides = array<i32: 4, 1>} : memref<68x8xf32, #tpu.memory_space<vmem>>, vector<17x8xf32>
    %28 = arith.truncf %27 : vector<17x8xf32> to vector<17x8xbf16>
    %c0_27 = arith.constant 0 : index
    %c8 = arith.constant 8 : index
    %29 = vector.load %arg13[%c0_27, %c8] : memref<18x32xbf16, #tpu.memory_space<vmem>>, vector<17x8xbf16>
    tpu.vector_store %arg13[%c0_27, %c8], %28 {strides = array<i32>} : memref<18x32xbf16, #tpu.memory_space<vmem>>, vector<17x8xbf16>,
    %c2_28 = arith.constant 2 : index
    %c0_29 = arith.constant 0 : index
    %30 = tpu.strided_load %arg12[%c2_28, %c0_29] {strides = array<i32: 4, 1>} : memref<68x8xf32, #tpu.memory_space<vmem>>, vector<17x8xf32>
    %31 = arith.truncf %30 : vector<17x8xf32> to vector<17x8xbf16>
    %c0_30 = arith.constant 0 : index
    %c16 = arith.constant 16 : index
    %32 = vector.load %arg13[%c0_30, %c16] : memref<18x32xbf16, #tpu.memory_space<vmem>>, vector<17x8xbf16>
    tpu.vector_store %arg13[%c0_30, %c16], %31 {strides = array<i32>} : memref<18x32xbf16, #tpu.memory_space<vmem>>, vector<17x8xbf16>,
    %c3 = arith.constant 3 : index
    %c0_31 = arith.constant 0 : index
    %33 = tpu.strided_load %arg12[%c3, %c0_31] {strides = array<i32: 4, 1>} : memref<68x8xf32, #tpu.memory_space<vmem>>, vector<17x8xf32>
    %34 = arith.truncf %33 : vector<17x8xf32> to vector<17x8xbf16>
    %c0_32 = arith.constant 0 : index
    %c24 = arith.constant 24 : index
    %35 = vector.load %arg13[%c0_32, %c24] : memref<18x32xbf16, #tpu.memory_space<vmem>>, vector<17x8xbf16>
    tpu.vector_store %arg13[%c0_32, %c24], %34 {strides = array<i32>} : memref<18x32xbf16, #tpu.memory_space<vmem>>, vector<17x8xbf16>,
    %cst_33 = arith.constant 0.000000e+00 : bf16
    %36 = vector.broadcast %cst_33 : bf16 to vector<1x32xbf16>
    %c17 = arith.constant 17 : index
    %c0_34 = arith.constant 0 : index
    %37 = vector.load %arg13[%c17, %c0_34] : memref<18x32xbf16, #tpu.memory_space<vmem>>, vector<1x32xbf16>
    tpu.vector_store %arg13[%c17, %c0_34], %36 {strides = array<i32>} : memref<18x32xbf16, #tpu.memory_space<vmem>>, vector<1x32xbf16>,
    %cst_35 = arith.constant 0.000000e+00 : f32
    %38 = vector.broadcast %cst_35 : f32 to vector<17x16xf32>
    %c0_36 = arith.constant 0 : index
    %c0_37 = arith.constant 0 : index
    %39 = vector.load %arg13[%c0_36, %c0_37] : memref<18x32xbf16, #tpu.memory_space<vmem>>, vector<17x32xbf16>
    %c0_38 = arith.constant 0 : index
    %c0_39 = arith.constant 0 : index
    %c0_40 = arith.constant 0 : index
    %40 = vector.load %arg4[%c0_38, %c0_39, %c0_40] : memref<2x32x16xbf16, #tpu.memory_space<vmem>>, vector<1x32x16xbf16>
    %41 = vector.shape_cast %40 : vector<1x32x16xbf16> to vector<32x16xbf16>
    %cst_41 = arith.constant dense<0.000000e+00> : vector<17x16xf32>
    %42 = tpu.matmul %39, %41, %cst_41 {dimension_numbers = #tpu.dot_dimension_numbers<[1], [0], [0], [1], [0, 0, 1, 1], [], []>} : vector<17x32xbf16>, vector<32x16xbf16>, vector<17x16xf32> -> vector<17x16xf32>
    %43 = arith.addf %38, %42 : vector<17x16xf32>
    %c1_42 = arith.constant 1 : index
    %c0_43 = arith.constant 0 : index
    %44 = vector.load %arg13[%c1_42, %c0_43] : memref<18x32xbf16, #tpu.memory_space<vmem>>, vector<17x32xbf16>
    %c1_44 = arith.constant 1 : index
    %c0_45 = arith.constant 0 : index
    %c0_46 = arith.constant 0 : index
    %45 = vector.load %arg4[%c1_44, %c0_45, %c0_46] : memref<2x32x16xbf16, #tpu.memory_space<vmem>>, vector<1x32x16xbf16>
    %46 = vector.shape_cast %45 : vector<1x32x16xbf16> to vector<32x16xbf16>
    %cst_47 = arith.constant dense<0.000000e+00> : vector<17x16xf32>
    %47 = tpu.matmul %44, %46, %cst_47 {dimension_numbers = #tpu.dot_dimension_numbers<[1], [0], [0], [1], [0, 0, 1, 1], [], []>} : vector<17x32xbf16>, vector<32x16xbf16>, vector<17x16xf32> -> vector<17x16xf32>
    %48 = arith.addf %43, %47 : vector<17x16xf32>
    %c0_48 = arith.constant 0 : index
    %c0_49 = arith.constant 0 : index
    %49 = vector.load %arg5[%c0_48, %c0_49] : memref<1x16xf32, #tpu.memory_space<vmem>>, vector<1x16xf32>
    %50 = vector.broadcast %49 : vector<1x16xf32> to vector<17x16xf32>
    %51 = arith.addf %48, %50 : vector<17x16xf32>
    %cst_50 = arith.constant 0.000000e+00 : f32
    %52 = vector.broadcast %cst_50 : f32 to vector<17x16xf32>
    %53 = arith.maximumf %51, %52 : vector<17x16xf32>
    %cst_51 = arith.constant 0.000000e+00 : f32
    %54 = vector.broadcast %cst_51 : f32 to vector<1x16xf32>
    %c0_52 = arith.constant 0 : index
    %c0_53 = arith.constant 0 : index
    %55 = vector.load %arg14[%c0_52, %c0_53] : memref<18x16xf32, #tpu.memory_space<vmem>>, vector<1x16xf32>
    tpu.vector_store %arg14[%c0_52, %c0_53], %54 {strides = array<i32>} : memref<18x16xf32, #tpu.memory_space<vmem>>, vector<1x16xf32>,
    %56 = vector.extract_strided_slice %53 {offsets = [0, 0], sizes = [16, 16], strides = [1, 1]} : vector<17x16xf32> to vector<16x16xf32>
    %c1_54 = arith.constant 1 : index
    %c0_55 = arith.constant 0 : index
    %57 = vector.load %arg14[%c1_54, %c0_55] : memref<18x16xf32, #tpu.memory_space<vmem>>, vector<16x16xf32>
    tpu.vector_store %arg14[%c1_54, %c0_55], %56 {strides = array<i32>} : memref<18x16xf32, #tpu.memory_space<vmem>>, vector<16x16xf32>,
    %cst_56 = arith.constant 0.000000e+00 : f32
    %58 = vector.broadcast %cst_56 : f32 to vector<1x16xf32>
    %c17_57 = arith.constant 17 : index
    %c0_58 = arith.constant 0 : index
    %59 = vector.load %arg14[%c17_57, %c0_58] : memref<18x16xf32, #tpu.memory_space<vmem>>, vector<1x16xf32>
    tpu.vector_store %arg14[%c17_57, %c0_58], %58 {strides = array<i32>} : memref<18x16xf32, #tpu.memory_space<vmem>>, vector<1x16xf32>,
    %c0_59 = arith.constant 0 : index
    %c0_60 = arith.constant 0 : index
    %60 = tpu.strided_load %arg14[%c0_59, %c0_60] {strides = array<i32: 2, 1>} : memref<18x16xf32, #tpu.memory_space<vmem>>, vector<9x16xf32>
    %61 = arith.truncf %60 : vector<9x16xf32> to vector<9x16xbf16>
    %c0_61 = arith.constant 0 : index
    %c0_62 = arith.constant 0 : index
    %62 = vector.load %arg15[%c0_61, %c0_62] : memref<10x32xbf16, #tpu.memory_space<vmem>>, vector<9x16xbf16>
    tpu.vector_store %arg15[%c0_61, %c0_62], %61 {strides = array<i32>} : memref<10x32xbf16, #tpu.memory_space<vmem>>, vector<9x16xbf16>,
    %c1_63 = arith.constant 1 : index
    %c0_64 = arith.constant 0 : index
    %63 = tpu.strided_load %arg14[%c1_63, %c0_64] {strides = array<i32: 2, 1>} : memref<18x16xf32, #tpu.memory_space<vmem>>, vector<9x16xf32>
    %64 = arith.truncf %63 : vector<9x16xf32> to vector<9x16xbf16>
    %c0_65 = arith.constant 0 : index
    %c16_66 = arith.constant 16 : index
    %65 = vector.load %arg15[%c0_65, %c16_66] : memref<10x32xbf16, #tpu.memory_space<vmem>>, vector<9x16xbf16>
    tpu.vector_store %arg15[%c0_65, %c16_66], %64 {strides = array<i32>} : memref<10x32xbf16, #tpu.memory_space<vmem>>, vector<9x16xbf16>,
    %cst_67 = arith.constant 0.000000e+00 : bf16
    %66 = vector.broadcast %cst_67 : bf16 to vector<1x32xbf16>
    %c9 = arith.constant 9 : index
    %c0_68 = arith.constant 0 : index
    %67 = vector.load %arg15[%c9, %c0_68] : memref<10x32xbf16, #tpu.memory_space<vmem>>, vector<1x32xbf16>
    tpu.vector_store %arg15[%c9, %c0_68], %66 {strides = array<i32>} : memref<10x32xbf16, #tpu.memory_space<vmem>>, vector<1x32xbf16>,
    %cst_69 = arith.constant 0.000000e+00 : f32
    %68 = vector.broadcast %cst_69 : f32 to vector<9x32xf32>
    %c0_70 = arith.constant 0 : index
    %c0_71 = arith.constant 0 : index
    %69 = vector.load %arg15[%c0_70, %c0_71] : memref<10x32xbf16, #tpu.memory_space<vmem>>, vector<9x32xbf16>
    %c0_72 = arith.constant 0 : index
    %c0_73 = arith.constant 0 : index
    %c0_74 = arith.constant 0 : index
    %70 = vector.load %arg6[%c0_72, %c0_73, %c0_74] : memref<2x32x32xbf16, #tpu.memory_space<vmem>>, vector<1x32x32xbf16>
    %71 = vector.shape_cast %70 : vector<1x32x32xbf16> to vector<32x32xbf16>
    %cst_75 = arith.constant dense<0.000000e+00> : vector<9x32xf32>
    %72 = tpu.matmul %69, %71, %cst_75 {dimension_numbers = #tpu.dot_dimension_numbers<[1], [0], [0], [1], [0, 0, 1, 1], [], []>} : vector<9x32xbf16>, vector<32x32xbf16>, vector<9x32xf32> -> vector<9x32xf32>
    %73 = arith.addf %68, %72 : vector<9x32xf32>
    %c1_76 = arith.constant 1 : index
    %c0_77 = arith.constant 0 : index
    %74 = vector.load %arg15[%c1_76, %c0_77] : memref<10x32xbf16, #tpu.memory_space<vmem>>, vector<9x32xbf16>
    %c1_78 = arith.constant 1 : index
    %c0_79 = arith.constant 0 : index
    %c0_80 = arith.constant 0 : index
    %75 = vector.load %arg6[%c1_78, %c0_79, %c0_80] : memref<2x32x32xbf16, #tpu.memory_space<vmem>>, vector<1x32x32xbf16>
    %76 = vector.shape_cast %75 : vector<1x32x32xbf16> to vector<32x32xbf16>
    %cst_81 = arith.constant dense<0.000000e+00> : vector<9x32xf32>
    %77 = tpu.matmul %74, %76, %cst_81 {dimension_numbers = #tpu.dot_dimension_numbers<[1], [0], [0], [1], [0, 0, 1, 1], [], []>} : vector<9x32xbf16>, vector<32x32xbf16>, vector<9x32xf32> -> vector<9x32xf32>
    %78 = arith.addf %73, %77 : vector<9x32xf32>
    %c0_82 = arith.constant 0 : index
    %c0_83 = arith.constant 0 : index
    %79 = vector.load %arg7[%c0_82, %c0_83] : memref<1x32xf32, #tpu.memory_space<vmem>>, vector<1x32xf32>
    %80 = vector.broadcast %79 : vector<1x32xf32> to vector<9x32xf32>
    %81 = arith.addf %78, %80 : vector<9x32xf32>
    %cst_84 = arith.constant 0.000000e+00 : f32
    %82 = vector.broadcast %cst_84 : f32 to vector<9x32xf32>
    %83 = arith.maximumf %81, %82 : vector<9x32xf32>
    %cst_85 = arith.constant 0.000000e+00 : f32
    %84 = vector.broadcast %cst_85 : f32 to vector<1x32xf32>
    %c0_86 = arith.constant 0 : index
    %c0_87 = arith.constant 0 : index
    %85 = vector.load %arg16[%c0_86, %c0_87] : memref<10x32xf32, #tpu.memory_space<vmem>>, vector<1x32xf32>
    tpu.vector_store %arg16[%c0_86, %c0_87], %84 {strides = array<i32>} : memref<10x32xf32, #tpu.memory_space<vmem>>, vector<1x32xf32>,
    %86 = vector.extract_strided_slice %83 {offsets = [0, 0], sizes = [8, 32], strides = [1, 1]} : vector<9x32xf32> to vector<8x32xf32>
    %c1_88 = arith.constant 1 : index
    %c0_89 = arith.constant 0 : index
    %87 = vector.load %arg16[%c1_88, %c0_89] : memref<10x32xf32, #tpu.memory_space<vmem>>, vector<8x32xf32>
    tpu.vector_store %arg16[%c1_88, %c0_89], %86 {strides = array<i32>} : memref<10x32xf32, #tpu.memory_space<vmem>>, vector<8x32xf32>,
    %cst_90 = arith.constant 0.000000e+00 : f32
    %88 = vector.broadcast %cst_90 : f32 to vector<1x32xf32>
    %c9_91 = arith.constant 9 : index
    %c0_92 = arith.constant 0 : index
    %89 = vector.load %arg16[%c9_91, %c0_92] : memref<10x32xf32, #tpu.memory_space<vmem>>, vector<1x32xf32>
    tpu.vector_store %arg16[%c9_91, %c0_92], %88 {strides = array<i32>} : memref<10x32xf32, #tpu.memory_space<vmem>>, vector<1x32xf32>,
    %c0_93 = arith.constant 0 : index
    %c0_94 = arith.constant 0 : index
    %90 = tpu.strided_load %arg16[%c0_93, %c0_94] {strides = array<i32: 2, 1>} : memref<10x32xf32, #tpu.memory_space<vmem>>, vector<5x32xf32>
    %91 = arith.truncf %90 : vector<5x32xf32> to vector<5x32xbf16>
    %c0_95 = arith.constant 0 : index
    %c0_96 = arith.constant 0 : index
    %92 = vector.load %arg17[%c0_95, %c0_96] : memref<6x64xbf16, #tpu.memory_space<vmem>>, vector<5x32xbf16>
    tpu.vector_store %arg17[%c0_95, %c0_96], %91 {strides = array<i32>} : memref<6x64xbf16, #tpu.memory_space<vmem>>, vector<5x32xbf16>,
    %c1_97 = arith.constant 1 : index
    %c0_98 = arith.constant 0 : index
    %93 = tpu.strided_load %arg16[%c1_97, %c0_98] {strides = array<i32: 2, 1>} : memref<10x32xf32, #tpu.memory_space<vmem>>, vector<5x32xf32>
    %94 = arith.truncf %93 : vector<5x32xf32> to vector<5x32xbf16>
    %c0_99 = arith.constant 0 : index
    %c32 = arith.constant 32 : index
    %95 = vector.load %arg17[%c0_99, %c32] : memref<6x64xbf16, #tpu.memory_space<vmem>>, vector<5x32xbf16>
    tpu.vector_store %arg17[%c0_99, %c32], %94 {strides = array<i32>} : memref<6x64xbf16, #tpu.memory_space<vmem>>, vector<5x32xbf16>,
    %cst_100 = arith.constant 0.000000e+00 : bf16
    %96 = vector.broadcast %cst_100 : bf16 to vector<1x64xbf16>
    %c5 = arith.constant 5 : index
    %c0_101 = arith.constant 0 : index
    %97 = vector.load %arg17[%c5, %c0_101] : memref<6x64xbf16, #tpu.memory_space<vmem>>, vector<1x64xbf16>
    tpu.vector_store %arg17[%c5, %c0_101], %96 {strides = array<i32>} : memref<6x64xbf16, #tpu.memory_space<vmem>>, vector<1x64xbf16>,
    %cst_102 = arith.constant 0.000000e+00 : f32
    %98 = vector.broadcast %cst_102 : f32 to vector<5x64xf32>
    %c0_103 = arith.constant 0 : index
    %c0_104 = arith.constant 0 : index
    %99 = vector.load %arg17[%c0_103, %c0_104] : memref<6x64xbf16, #tpu.memory_space<vmem>>, vector<5x64xbf16>
    %c0_105 = arith.constant 0 : index
    %c0_106 = arith.constant 0 : index
    %c0_107 = arith.constant 0 : index
    %100 = vector.load %arg8[%c0_105, %c0_106, %c0_107] : memref<2x64x64xbf16, #tpu.memory_space<vmem>>, vector<1x64x64xbf16>
    %101 = vector.shape_cast %100 : vector<1x64x64xbf16> to vector<64x64xbf16>
    %cst_108 = arith.constant dense<0.000000e+00> : vector<5x64xf32>
    %102 = tpu.matmul %99, %101, %cst_108 {dimension_numbers = #tpu.dot_dimension_numbers<[1], [0], [0], [1], [0, 0, 1, 1], [], []>} : vector<5x64xbf16>, vector<64x64xbf16>, vector<5x64xf32> -> vector<5x64xf32>
    %103 = arith.addf %98, %102 : vector<5x64xf32>
    %c1_109 = arith.constant 1 : index
    %c0_110 = arith.constant 0 : index
    %104 = vector.load %arg17[%c1_109, %c0_110] : memref<6x64xbf16, #tpu.memory_space<vmem>>, vector<5x64xbf16>
    %c1_111 = arith.constant 1 : index
    %c0_112 = arith.constant 0 : index
    %c0_113 = arith.constant 0 : index
    %105 = vector.load %arg8[%c1_111, %c0_112, %c0_113] : memref<2x64x64xbf16, #tpu.memory_space<vmem>>, vector<1x64x64xbf16>
    %106 = vector.shape_cast %105 : vector<1x64x64xbf16> to vector<64x64xbf16>
    %cst_114 = arith.constant dense<0.000000e+00> : vector<5x64xf32>
    %107 = tpu.matmul %104, %106, %cst_114 {dimension_numbers = #tpu.dot_dimension_numbers<[1], [0], [0], [1], [0, 0, 1, 1], [], []>} : vector<5x64xbf16>, vector<64x64xbf16>, vector<5x64xf32> -> vector<5x64xf32>
    %108 = arith.addf %103, %107 : vector<5x64xf32>
    %c0_115 = arith.constant 0 : index
    %c0_116 = arith.constant 0 : index
    %109 = vector.load %arg9[%c0_115, %c0_116] : memref<1x64xf32, #tpu.memory_space<vmem>>, vector<1x64xf32>
    %110 = vector.broadcast %109 : vector<1x64xf32> to vector<5x64xf32>
    %111 = arith.addf %108, %110 : vector<5x64xf32>
    %cst_117 = arith.constant 0.000000e+00 : f32
    %112 = vector.broadcast %cst_117 : f32 to vector<5x64xf32>
    %113 = arith.maximumf %111, %112 : vector<5x64xf32>
    %c0_118 = arith.constant 0 : index
    %c0_119 = arith.constant 0 : index
    %114 = vector.load %arg10[%c0_118, %c0_119] : memref<1x5xf32, #tpu.memory_space<vmem>>, vector<1x5xf32>
    %cst_120 = arith.constant dense<0.000000e+00> : vector<1x64xf32>
    %115 = tpu.matmul %114, %113, %cst_120 {dimension_numbers = #tpu.dot_dimension_numbers<[1], [0], [0], [1], [0, 0, 1, 1], [], []>} : vector<1x5xf32>, vector<5x64xf32>, vector<1x64xf32> -> vector<1x64xf32>
    %c0_121 = arith.constant 0 : index
    %c0_122 = arith.constant 0 : index
    %c0_123 = arith.constant 0 : index
    %116 = vector.load %arg11[%c0_121, %c0_122, %c0_123] : memref<1x1x64xf32, #tpu.memory_space<vmem>>, vector<1x1x64xf32>
    %117 = vector.shape_cast %116 : vector<1x1x64xf32> to vector<1x64xf32>
    %118 = vector.shape_cast %115 : vector<1x64xf32> to vector<1x1x64xf32>
    tpu.vector_store %arg11[%c0_121, %c0_122, %c0_123], %118 {strides = array<i32>} : memref<1x1x64xf32, #tpu.memory_space<vmem>>, vector<1x1x64xf32>,
    return
  }
  func.func @transform_0(%arg0: i32) -> (i32, i32, i32) {
    %c0_i32 = arith.constant 0 : i32
    %c0_i32_0 = arith.constant 0 : i32
    %c0_i32_1 = arith.constant 0 : i32
    return %arg0, %c0_i32, %c0_i32_0 : i32, i32, i32
  }
  func.func @transform_1(%arg0: i32) -> (i32, i32, i32) {
    %c0_i32 = arith.constant 0 : i32
    %c0_i32_0 = arith.constant 0 : i32
    %c0_i32_1 = arith.constant 0 : i32
    %c0_i32_2 = arith.constant 0 : i32
    return %c0_i32, %c0_i32_0, %c0_i32_1 : i32, i32, i32
  }
  func.func @transform_2(%arg0: i32) -> (i32, i32) {
    %c0_i32 = arith.constant 0 : i32
    %c0_i32_0 = arith.constant 0 : i32
    %c0_i32_1 = arith.constant 0 : i32
    return %c0_i32, %c0_i32_0 : i32, i32
  }
  func.func @transform_3(%arg0: i32) -> (i32, i32, i32) {
    %c0_i32 = arith.constant 0 : i32
    %c0_i32_0 = arith.constant 0 : i32
    %c0_i32_1 = arith.constant 0 : i32
    %c0_i32_2 = arith.constant 0 : i32
    return %c0_i32, %c0_i32_0, %c0_i32_1 : i32, i32, i32
  }
  func.func @transform_4(%arg0: i32) -> (i32, i32) {
    %c0_i32 = arith.constant 0 : i32
    %c0_i32_0 = arith.constant 0 : i32
    %c0_i32_1 = arith.constant 0 : i32
    return %c0_i32, %c0_i32_0 : i32, i32
  }
  func.func @transform_5(%arg0: i32) -> (i32, i32, i32) {
    %c0_i32 = arith.constant 0 : i32
    %c0_i32_0 = arith.constant 0 : i32
    %c0_i32_1 = arith.constant 0 : i32
    %c0_i32_2 = arith.constant 0 : i32
    return %c0_i32, %c0_i32_0, %c0_i32_1 : i32, i32, i32
  }
  func.func @transform_6(%arg0: i32) -> (i32, i32) {
    %c0_i32 = arith.constant 0 : i32
    %c0_i32_0 = arith.constant 0 : i32
    %c0_i32_1 = arith.constant 0 : i32
    return %c0_i32, %c0_i32_0 : i32, i32
  }
  func.func @transform_7(%arg0: i32) -> (i32, i32, i32) {
    %c0_i32 = arith.constant 0 : i32
    %c0_i32_0 = arith.constant 0 : i32
    %c0_i32_1 = arith.constant 0 : i32
    %c0_i32_2 = arith.constant 0 : i32
    return %c0_i32, %c0_i32_0, %c0_i32_1 : i32, i32, i32
  }
  func.func @transform_8(%arg0: i32) -> (i32, i32) {
    %c0_i32 = arith.constant 0 : i32
    %c0_i32_0 = arith.constant 0 : i32
    %c0_i32_1 = arith.constant 0 : i32
    return %c0_i32, %c0_i32_0 : i32, i32
  }
  func.func @transform_9(%arg0: i32) -> (i32, i32) {
    %c0_i32 = arith.constant 0 : i32
    %c0_i32_0 = arith.constant 0 : i32
    %c0_i32_1 = arith.constant 0 : i32
    return %c0_i32, %c0_i32_0 : i32, i32
  }
  func.func @transform_10(%arg0: i32) -> (i32, i32, i32) {
    %c0_i32 = arith.constant 0 : i32
    %c0_i32_0 = arith.constant 0 : i32
    %c0_i32_1 = arith.constant 0 : i32
    return %arg0, %c0_i32, %c0_i32_0 : i32, i32, i32
  }
}

</mosaic_0001>

<bundles_post_ra>
// kernel: signal_encoder_forward.1
= control target key start
LH: loop header
LB: loop body
LE: loop exit
PB: predicated region body
PF: predicated region fallthrough
CT: control target
= control target key end

     0   :  { %15 = vsyncpa [#allocation9], 0  ;;  %s2266_s0 = inlined_call_operand.vmem [shape: bf16[2,66,16], index: 0, kind: input, shape index: {}]   ;;  %s2267_s1 = inlined_call_operand.vmem [shape: bf16[2,16,8], index: 1, kind: input, shape index: {}]   ;;  %s2268_s2 = inlined_call_operand.vmem [shape: f32[1,8], index: 2, kind: input, shape index: {}]   ;;  %s2269_s3 = inlined_call_operand.vmem [shape: bf16[2,32,16], index: 3, kind: input, shape index: {}]   ;;  %s2270_s4 = inlined_call_operand.vmem [shape: f32[1,16], index: 4, kind: input, shape index: {}]   ;;  %s2271_s5 = inlined_call_operand.vmem [shape: bf16[2,32,32], index: 5, kind: input, shape index: {}]   ;;  %s2272_s6 = inlined_call_operand.vmem [shape: f32[1,32], index: 6, kind: input, shape index: {}]   ;;  %s2273_s7 = inlined_call_operand.vmem [shape: bf16[2,64,64], index: 7, kind: input, shape index: {}]   ;;  %s2274_s8 = inlined_call_operand.vmem [shape: f32[1,64], index: 8, kind: input, shape index: {}]   ;;  %s2275_s9 = inlined_call_operand.vmem [shape: f32[1,5], index: 9, kind: input, shape index: {}]   ;;  %s2276_s10 = inlined_call_operand.hbm [shape: f32[2,1,64], index: 10, kind: output, shape index: {}]  }
   0x1   :  { %17 = vsyncpa [#allocation9 + $0x1], 0  ;;  %s1951_s13 = smov 0   ;;  %s1953_s14 = smov 0  }
   0x2   :  { %s1955_s15 = smov 0   ;;  %s1957_s16 = smov 0  }
   0x3 LB: > { %s1972_s17 = sadd.s32 4294967295, %s1887_s16   ;;  %s1498_s18 = sadd.s32 4294967294, %s1887_s16   ;;  %s1887_s16 = sphi %s1957_s16, %s2284_s16   ;;  %s1883_s15 = sphi %s1955_s15, %s2283_s15   ;;  %s1879_s14 = sphi %s1953_s14, %s2282_s14   ;;  %s1875_s13 = sphi %s1951_s13, %s2281_s13  }
   0x4   : > { %s1976_s19 = sadd.s32 1, %s1887_s16   ;;  %s245_s20 = sadd.s32 1, %s1883_s15 }
   0x5   : > { %s242_s21 = ssub.s32 %s1887_s16, %s1976_s19  ;;  %p255_p0 = scmp.ne.s32.totalorder %s1883_s15, %s1879_s14 }
   0x6   : > { %p243_p1 = scmp.eq.s32.totalorder %s242_s21, 0  ;;  %p256_p2 = scmp.eq.s32.totalorder %s1972_s17, 1 }
   0x7   : > { %p261_p3 = scmp.ne.s32.totalorder %s1879_s14, %s1875_s13  ;;  %p262_p4 = scmp.eq.s32.totalorder %s1498_s18, 1 }
   0x8   : > { %s1987_s22 = scalar_select %p243_p1, %s1883_s15, %s245_s20  }
   0x9   : > { %p1989_p5 = por %p256_p2, %p255_p0  ;;  %p1993_p6 = por %p262_p4, %p261_p3 }
   0xa   : > { %p1501_p7 = scmp.ge.s32.totalorder %s1887_s16, 1  ;;  %p315_p8 = scmp.lt.s32.totalorder %s1887_s16, 3 }
   0xc   : > { %p316_p9 = pnand %p1501_p7, %p315_p8 }
   0xd   : > { %v1798_v0 = vld [vmem:[%s2267_s1] sm:$0xff] (!%p316_p9)   ;;  %v1889_v1 = vmov (!%p316_p9), 0.0   ;;  %v1799_v2 = vld [vmem:[%s2267_s1 + $0x8] sm:$0xff] (!%p316_p9)   ;;  %vm1890_vm0 = vmmov (!%p316_p9), 0   ;;  %p352_p10 = scmp.lt.s32.totalorder (!%p316_p9), %s1972_s17, 1  ;;  %vm440_vm1 = vcmask (!%p316_p9), 130048  }
   0xe   : > { %319 = sbr.rel (%p316_p9) target bundleno = 1619 (0x653), region = 60  ;;  %1669 = vmatprep.subr.bf16.mxu1 (!%p316_p9), %v1889_v1  ;;  %1647 = vmatprep.subr.bf16.mxu0 (!%p316_p9), %v1889_v1  ;;  %vm395_vm2 = vsmask.f32 (!%p316_p9), 7424  ;;  %vm637_vm3 = vcmask (!%p316_p9), 58368   ;;  %s1891_s20 = smov (!%p316_p9), 24   ;;  %vm639_vm4 = vcmask (!%p316_p9), 64512  }
   0xf   : > { %1670 = vmatpush3.bf16.msra.mxu1 (!%p316_p9), %v1798_v0  ;;  %1671 = vmatprep.mubr.msk.bf16.mxu1 (!%p316_p9), %vm1890_vm0, %v1889_v1  ;;  %648 = vst.msk [vmem:[#allocation2 + $0x42] sm:$0x3] (!%p316_p9), %vm637_vm3, %v1889_v1  ;;  %638 = vst.msk [vmem:[#allocation2] sm:$0x3] (!%p316_p9), %vm637_vm3, %v1889_v1  ;;  %v2062_v37 = vld [vmem:[%s2268_s2] ss:$0 sm:$0xff] (!%p316_p9) }
  0x10   : > { %1648 = vmatpush3.bf16.msra.mxu0 (!%p316_p9), %v1799_v2  ;;  %1649 = vmatprep.mubr.msk.bf16.mxu0 (!%p316_p9), %vm1890_vm0, %v1889_v1  ;;  %vm667_vm5 = vcmask (!%p316_p9), 60416   ;;  %s1892_s26 = smov (!%p316_p9), 8   ;;  %s1893_s27 = smov (!%p316_p9), 16   ;;  %vm775_vm6 = vcmask (!%p316_p9), 253952   ;;  %vm670_vm7 = vcmask (!%p316_p9), 57344   ;;  %vm955_vm10 = vcmask (!%p316_p9), 122880  }
  0x11   : > { %1146 = vst.msk [vmem:[#allocation6] sm:$0x1] (!%p316_p9), %vm775_vm6, %v1889_v1  ;;  %1148 = vst.msk [vmem:[#allocation6 + $0x9] sm:$0x1] (!%p316_p9), %vm775_vm6, %v1889_v1  ;;  %vm671_vm8 = vsmask.f32 (!%p316_p9), 256 }
  0x12   : > { %vm672_vm9 = vmand (!%p316_p9), %vm670_vm7, %vm671_vm8  ;;  %959 = vst.msk [vmem:[#allocation4 + $0x11] sm:$0x1] (!%p316_p9), %vm955_vm10, %v1889_v1  ;;  %vm701_vm11 = vcmask (!%p316_p9), 126016   ;;  %vm734_vm12 = vcmask (!%p316_p9), 191616   ;;  %vm767_vm13 = vcmask (!%p316_p9), 257216   ;;  %vm704_vm14 = vcmask (!%p316_p9), 122944  }
  0x13   : > { %956 = vst.msk [vmem:[#allocation4] sm:$0x1] (!%p316_p9), %vm955_vm10, %v1889_v1  ;;  %vm705_vm15 = vmand (!%p316_p9), %vm704_vm14, %vm671_vm8  ;;  %vm737_vm3 = vcmask (!%p316_p9), 188544   ;;  %vm827_vm14 = vcmask (!%p316_p9), 261120   ;;  %s1894_s25 = smov (!%p316_p9), 32  }
  0x15   : > { %s353_s29 = scalar_select %p352_p10, %s1972_s17, 1 }
  0x16   : > { %v747_v30 = vld [vmem:[#allocation2 + $0x43] ss:$4 sm:$0x1] }
  0x17   : > { %s1752_s30 = smul.u32 36, %s353_s29  ;;  %v1603_v31 = vpack.c.bf16 %v747_v30, %v747_v30 }
  0x19   : > { %s2016_s18 = scalar_lea.vmem %s2266_s0, %s1752_s30  ;;  %762 = vrot.lane.b32.xlu1 %v1603_v31, %s1891_s20 }
  0x1a   : > { %v1800_v3 = vld [vmem:[%s2016_s18] sm:$0xff]   ;;  %v1801_v4 = vld [vmem:[%s2016_s18 + $0x8] sm:$0xff]   ;;  %v1802_v8 = vld [vmem:[%s2016_s18 + $0x10] sm:$0xff]  }
  0x1b   : > { %1672 = vmatmul.mubr.msk.bf16.vlgmr.msra.gmra.mrb[0].mxu1 %vm440_vm1, %v1800_v3  ;;  %v397_v5 = vshrl.u32 %v1800_v3, 16  ;;  %v399_v6 = vshll.u32 %v1800_v3, 16  ;;  %v404_v7 = vshll.u32 %v1801_v4, 16  ;;  %v408_v12 = vshrl.u32 %v1801_v4, 16  ;;  %v1803_v17 = vld [vmem:[%s2016_s18 + $0x18] sm:$0xff]  }
  0x1c   : > { %1675 = vmatprep.mubr.msk.bf16.mxu1 %vm1890_vm0, %v1889_v1  ;;  %v412_v13 = vshll.u32 %v1802_v8, 16  ;;  %v416_v19 = vshrl.u32 %v1802_v8, 16  ;;  %v420_v20 = vshll.u32 %v1803_v17, 16  ;;  %v2038_v23 = vld [vmem:[%s2016_s18 + $0x20] ss:$0 sps:$4 sm:$0x11]  }
  0x1d   : > { %v401_v9 = vrot.slane %v399_v6, 1  ;;  %v406_v10 = vrot.slane %v404_v7, 1  ;;  %v424_v25 = vshrl.u32 %v1803_v17, 16  ;;  %v428_v26 = vshll.u32 %v2038_v23, 16 }
  0x1e   : > { %v414_v16 = vrot.slane %v412_v13, 1  ;;  %v422_v22 = vrot.slane %v420_v20, 1 }
  0x1f   : > { %v402_v11 = vor.u32 %v401_v9, %v397_v5  ;;  %v410_v15 = vor.u32 %v408_v12, %v406_v10  ;;  %v430_v28 = vrot.slane %v428_v26, 1 }
  0x20   : > { %v418_v21 = vor.u32 %v416_v19, %v414_v16  ;;  %v426_v27 = vor.u32 %v424_v25, %v422_v22 }
  0x21   : > { %v407_v14 = vsel %vm395_vm2, %v402_v11, %v406_v10  ;;  %v415_v18 = vsel %vm395_vm2, %v410_v15, %v414_v16 }
  0x22   : > { %1650 = vmatmul.mubr.msk.bf16.vlgmr.msra.gmra.mrb[0].mxu0 %vm440_vm1, %v407_v14  ;;  %v423_v24 = vsel %vm395_vm2, %v418_v21, %v422_v22  ;;  %v431_v29 = vsel %vm395_vm2, %v426_v27, %v430_v28 }
  0x23   : > { %1676 = vmatmul.mubr.msk.bf16.gmra.mrb[4].mxu1 %vm440_vm1, %v1801_v4  ;;  %1653 = vmatprep.mubr.msk.bf16.mxu0 %vm1890_vm0, %v1889_v1 }
  0x24   : > { %1679 = vmatprep.mubr.msk.bf16.mxu1 %vm1890_vm0, %v1889_v1 }
  0x2a   : > { %1654 = vmatmul.mubr.msk.bf16.gmra.mrb[4].mxu0 %vm440_vm1, %v415_v18 }
  0x2b   : > { %1680 = vmatmul.mubr.msk.bf16.gmra.mrb[8].mxu1 %vm440_vm1, %v1802_v8  ;;  %1657 = vmatprep.mubr.msk.bf16.mxu0 %vm1890_vm0, %v1889_v1 }
  0x2c   : > { %1683 = vmatprep.mubr.msk.bf16.mxu1 %vm1890_vm0, %v1889_v1 }
  0x32   : > { %1658 = vmatmul.mubr.msk.bf16.gmra.mrb[8].mxu0 %vm440_vm1, %v423_v24 }
  0x33   : > { %1684 = vmatmul.mubr.msk.bf16.gmra.mrb[12].mxu1 %vm440_vm1, %v1803_v17  ;;  %1661 = vmatprep.mubr.msk.bf16.mxu0 %vm1890_vm0, %v1889_v1 }
  0x34   : > { %1687 = vmatprep.mubr.msk.bf16.mxu1 %vm1890_vm0, %v1889_v1 }
  0x3a   : > { %1662 = vmatmul.mubr.msk.bf16.gmra.mrb[12].mxu0 %vm440_vm1, %v431_v29 }
  0x3b   : > { %1688 = vmatmul.mubr.msk.bf16.gmra.mrb[16].mxu1 %vm440_vm1, %v2038_v23  ;;  %1665 = vmatprep.mubr.msk.bf16.mxu0 %vm1890_vm0, %v1889_v1 }
  0xee   : > { %v577_v32 = vpop.f32.mrb[0].mxu1 }
  0xef   : > { %v1673_v33 = vpop.f32.mrb[1].mxu1 }
  0xf0   : > { %v580_v34 = vpop.f32.mrb[2].mxu1 }
  0xf1   : > { %v1674_v35 = vpop.f32.mrb[3].mxu1 }
  0xf5   : > { %v490_v36 = vpop.f32.mrb[0].mxu0 }
  0xf6   : > { %v578_v38 = vadd.f32 %v577_v32, %v490_v36  ;;  %v1651_v39 = vpop.f32.mrb[1].mxu0  ;;  %v585_v40 = vpop.f32.mrb[4].mxu1 }
  0xf7   : > { %v493_v41 = vpop.f32.mrb[2].mxu0  ;;  %v1677_v42 = vpop.f32.mrb[5].mxu1 }
  0xf8   : > { %v621_v43 = vadd.f32 %v2062_v37, %v578_v38  ;;  %v581_v44 = vadd.f32 %v580_v34, %v493_v41  ;;  %v1652_v45 = vpop.f32.mrb[3].mxu0  ;;  %v588_v46 = vpop.f32.mrb[6].mxu1 }
  0xf9   : > { %v1678_v47 = vpop.f32.mrb[7].mxu1 }
  0xfa   : > { %v629_v48 = vmax.f32 %v621_v43, 0.0  ;;  %v622_v49 = vadd.f32 %v2062_v37, %v581_v44  ;;  %v673_v43 = vld [vmem:[#allocation3 + $0x8] sm:$0x1] }
  0xfc   : > { %640 = vst.msk [vmem:[#allocation2 + $0x2] sm:$0xff] %vm639_vm4, %v629_v48  ;;  %v630_v50 = vmax.f32 %v622_v49, 0.0 }
  0xfd   : > { %v498_v51 = vpop.f32.mrb[4].mxu0 }
  0xfe   : > { %641 = vst.msk [vmem:[#allocation2 + $0xa] sm:$0xff] %vm639_vm4, %v630_v50  ;;  %v586_v52 = vadd.f32 %v585_v40, %v498_v51  ;;  %v1655_v53 = vpop.f32.mrb[5].mxu0  ;;  %v593_v54 = vpop.f32.mrb[8].mxu1  ;;  %v714_v40 = vld [vmem:[#allocation2 + $0x42] ss:$4 sm:$0x1] }
  0xff   : > { %v501_v55 = vpop.f32.mrb[6].mxu0  ;;  %v1681_v56 = vpop.f32.mrb[9].mxu1 }
 0x100   : > { %v623_v57 = vadd.f32 %v2062_v37, %v586_v52  ;;  %v589_v58 = vadd.f32 %v588_v46, %v501_v55  ;;  %v1656_v59 = vpop.f32.mrb[7].mxu0  ;;  %v596_v60 = vpop.f32.mrb[10].mxu1  ;;  %v1600_v46 = vpack.c.bf16 %v714_v40, %v714_v40  ;;  %v1805_v55 = vld [vmem:[%s2269_s3 + $0x10] sm:$0xff]   ;;  %v1806_v56 = vld [vmem:[%s2269_s3] sm:$0xff]  }
 0x101   : > { %v1682_v61 = vpop.f32.mrb[11].mxu1  ;;  %v432_v59 = vshrl.u32 %v2038_v23, 16  ;;  %1691 = vmatprep.subr.bf16.mxu0 %v1805_v55  ;;  %1699 = vmatprep.subr.bf16.mxu1 %v1806_v56  ;;  %v981_v23 = vld [vmem:[#allocation4 + $0x11] ss:$2 sm:$0x1] }
 0x102   : > { %v631_v62 = vmax.f32 %v623_v57, 0.0  ;;  %v624_v63 = vadd.f32 %v2062_v37, %v589_v58  ;;  %v1808_v57 = vld [vmem:[%s2269_s3 + $0x18] sm:$0xff]   ;;  %v1809_v58 = vld [vmem:[%s2269_s3 + $0x8] sm:$0xff]   ;;  %1692 = vmatpush3.bf16.msra.mxu0 %v1805_v55  ;;  %1700 = vmatpush3.bf16.msra.mxu1 %v1806_v56  ;;  %v763_v61 = vpop.permute.xlu1 %762 }
 0x103   : > { %1693 = vmatprep.subr.bf16.mxu0 %v1808_v57  ;;  %1701 = vmatprep.subr.bf16.mxu1 %v1809_v58 }
 0x104   : > { %642 = vst.msk [vmem:[#allocation2 + $0x12] sm:$0xff] %vm639_vm4, %v631_v62  ;;  %v632_v0 = vmax.f32 %v624_v63, 0.0  ;;  %1666 = vmatmul.mubr.msk.bf16.gmra.mrb[16].mxu0 %vm440_vm1, %v432_v59 }
 0x105   : > { %v506_v2 = vpop.f32.mrb[8].mxu0 }
 0x106   : > { %643 = vst.msk [vmem:[#allocation2 + $0x1a] sm:$0xff] %vm639_vm4, %v632_v0  ;;  %v594_v3 = vadd.f32 %v593_v54, %v506_v2  ;;  %v1659_v4 = vpop.f32.mrb[9].mxu0  ;;  %v601_v5 = vpop.f32.mrb[12].mxu1  ;;  %1694 = vmatpush3.bf16.msra.mxu0 %v1808_v57  ;;  %1702 = vmatpush3.bf16.msra.mxu1 %v1809_v58 }
 0x107   : > { %v509_v6 = vpop.f32.mrb[10].mxu0  ;;  %v1685_v7 = vpop.f32.mrb[13].mxu1  ;;  %1715 = vmatprep.subr.bf16.mxu1 %v1889_v1  ;;  %1707 = vmatprep.subr.bf16.mxu0 %v1889_v1 }
 0x108   : > { %v625_v8 = vadd.f32 %v2062_v37, %v594_v3  ;;  %v597_v9 = vadd.f32 %v596_v60, %v509_v6  ;;  %v1660_v10 = vpop.f32.mrb[11].mxu0  ;;  %v604_v11 = vpop.f32.mrb[14].mxu1  ;;  %v1607_v60 = vpack.c.bf16 %v981_v23, %v981_v23 }
 0x109   : > { %v1686_v12 = vpop.f32.mrb[15].mxu1 }
 0x10a   : > { %v633_v13 = vmax.f32 %v625_v8, 0.0  ;;  %v626_v14 = vadd.f32 %v2062_v37, %v597_v9 }
 0x10c   : > { %644 = vst.msk [vmem:[#allocation2 + $0x22] sm:$0xff] %vm639_vm4, %v633_v13  ;;  %v634_v15 = vmax.f32 %v626_v14, 0.0 }
 0x10d   : > { %v514_v16 = vpop.f32.mrb[12].mxu0  ;;  %v677_v17 = vld [vmem:[#allocation2 + $0x1] ss:$4 sm:$0xff]  ;;  %v649_v21 = vld [vmem:[#allocation2] ss:$4 sm:$0xff] }
 0x10e   : > { %645 = vst.msk [vmem:[#allocation2 + $0x2a] sm:$0xff] %vm639_vm4, %v634_v15  ;;  %v602_v18 = vadd.f32 %v601_v5, %v514_v16  ;;  %v1663_v19 = vpop.f32.mrb[13].mxu0  ;;  %v1595_v20 = vpack.c.bf16 %v677_v17, %v677_v17  ;;  %v609_v22 = vpop.f32.mrb[16].mxu1  ;;  %v710_v25 = vld [vmem:[#allocation2 + $0x2] ss:$4 sm:$0xff]  ;;  %v1592_v26 = vpack.c.bf16 %v649_v21, %v649_v21 }
 0x10f   : > { %v517_v24 = vpop.f32.mrb[14].mxu0  ;;  %v1689_v27 = vpop.f32.mrb[17].mxu1  ;;  %v1598_v35 = vpack.c.bf16 %v710_v25, %v710_v25  ;;  %v743_v36 = vld [vmem:[#allocation2 + $0x3] ss:$4 sm:$0xff] }
 0x110   : > { %v627_v28 = vadd.f32 %v2062_v37, %v602_v18  ;;  %v605_v29 = vadd.f32 %v604_v11, %v517_v24  ;;  %692 = vrot.lane.b32.xlu1 %v1595_v20, %s1892_s26  ;;  %v1664_v30 = vpop.f32.mrb[15].mxu0  ;;  %v611_v31 = vpop.f32.mrb[18].mxu1  ;;  %668 = vst.msk [vmem:[#allocation3] sm:$0xf] %vm667_vm5, %v1592_v26  ;;  %v1601_v39 = vpack.c.bf16 %v743_v36, %v743_v36 }
 0x111   : > { %v1690_v32 = vpop.f32.mrb[19].mxu1 }
 0x112   : > { %v635_v33 = vmax.f32 %v627_v28, 0.0  ;;  %v628_v34 = vadd.f32 %v2062_v37, %v605_v29 }
 0x114   : > { %646 = vst.msk [vmem:[#allocation2 + $0x32] sm:$0xff] %vm639_vm4, %v635_v33  ;;  %v636_v38 = vmax.f32 %v628_v34, 0.0  ;;  %725 = vrot.lane.b32.xlu1 %v1598_v35, %s1893_s27 }
 0x116   : > { %647 = vst.msk [vmem:[#allocation2 + $0x3a] sm:$0xff] %vm639_vm4, %v636_v38  ;;  %vm738_vm4 = vmand %vm737_vm3, %vm671_vm8  ;;  %v1549_v38 = vld [vmem:[%s2270_s4] ss:$0 sm:$0xff]  ;;  %vm1166_vm3 = vcmask 518400  }
 0x118   : > { %758 = vrot.lane.b32.xlu1 %v1601_v39, %s1891_s20 }
 0x11c   : > { %990 = vrot.lane.b32.xlu1 %v1607_v60, %s1893_s27 }
 0x11d   : > { %v681_v37 = vld [vmem:[#allocation2 + $0x41] ss:$4 sm:$0x1]  ;;  %v651_v42 = vld [vmem:[#allocation2 + $0x20] ss:$4 sm:$0xff] }
 0x11e   : > { %v1597_v41 = vpack.c.bf16 %v681_v37, %v681_v37  ;;  %v653_v44 = vld [vmem:[#allocation2 + $0x40] ss:$4 sm:$0x1]  ;;  %v1593_v45 = vpack.c.bf16 %v651_v42, %v651_v42  ;;  %v679_v49 = vld [vmem:[#allocation2 + $0x21] ss:$4 sm:$0xff] }
 0x11f   : > { %v1594_v47 = vpack.c.bf16 %v653_v44, %v653_v44  ;;  %v1596_v50 = vpack.c.bf16 %v679_v49, %v679_v49  ;;  %v712_v51 = vld [vmem:[#allocation2 + $0x22] ss:$4 sm:$0xff]  ;;  %v745_v53 = vld [vmem:[#allocation2 + $0x23] ss:$4 sm:$0xff]  ;;  %v975_v49 = vld [vmem:[#allocation5 + $0x4] sm:$0x1] }
 0x120   : > { %696 = vrot.lane.b32.xlu0 %v1597_v41, %s1892_s26  ;;  %669 = vst.msk [vmem:[#allocation3 + $0x4] sm:$0xf] %vm667_vm5, %v1593_v45  ;;  %v1599_v52 = vpack.c.bf16 %v712_v51, %v712_v51  ;;  %v1602_v54 = vpack.c.bf16 %v745_v53, %v745_v53  ;;  %vm770_vm5 = vcmask 254144   ;;  %v1811_v45 = vld [vmem:[%s2271_s5] sm:$0xff]  }
 0x121   : > { %v674_v48 = vsel %vm672_vm9, %v1594_v47, %v673_v43  ;;  %vm771_vm7 = vmand %vm770_vm5, %vm671_vm8  ;;  %vm776_vm9 = vsmask.f32 7938  ;;  %vm1171_vm5 = vcmask 518146  }
 0x122   : > { %675 = vst [vmem:[#allocation3 + $0x8] sm:$0x1] %v674_v48  ;;  %v1812_v48 = vld [vmem:[%s2271_s5 + $0x8] sm:$0xff]  }
 0x124   : > { %729 = vrot.lane.b32.xlu0 %v1600_v46, %s1893_s27  ;;  %v1813_v46 = vld [vmem:[%s2271_s5 + $0x10] sm:$0xff]  }
 0x128   : > { %694 = vrot.lane.b32.xlu0 %v1596_v50, %s1892_s26  ;;  %v1815_v50 = vld [vmem:[%s2271_s5 + $0x18] sm:$0xff]   ;;  %s1589_s26 = sshll.u32 %s1972_s17, 4  ;;  %s1895_s17 = smov [#allocation8]  }
 0x129   : > { %v706_v3 = vld [vmem:[#allocation3 + $0x8] sm:$0x1]  ;;  %s2224_s12 = scalar_lea.hbm %s2276_s10, %s1589_s26 }
 0x12c   : > { %727 = vrot.lane.b32.xlu0 %v1599_v52, %s1893_s27 }
 0x130   : > { %760 = vrot.lane.b32.xlu0 %v1602_v54, %s1891_s20  ;;  %s350_s20 = sand.u32 1, %s1879_s14  }
 0x131   : > { %s351_s28 = scalar_lea.vmem [#allocation8], %s350_s20  ;;  %s1431_s18 = scalar_lea.sflag [#allocation9], %s350_s20 }
 0x132   : > { %s1443_s29 = sshll.u32 %s351_s28, 4  ;;  %s2226_s29 = int_to_ptr.vmem [resolvable:$true] %s1443_s29 }
 0x133   : > { %s1825_s21 = scalar_lea.vmem %s2226_s29, 16 }
 0x134   : > { %p1826_p11 = scmp.ne.s32.totalorder %s2226_s29, %s1825_s21 }
 0x136   : > { %p1827_p12 = pnand %p1826_p11, %p1989_p5 }
 0x138   : > { %p1828_p13 = pneg %p1827_p12 }
 0x182   : > { %v693_v62 = vpop.permute.xlu1 %692 }
 0x183   : > { %702 = vst.msk [vmem:[#allocation3] sm:$0xf] %vm701_vm11, %v693_v62 }
 0x186   : > { %v726_v63 = vpop.permute.xlu1 %725 }
 0x187   : > { %735 = vst.msk [vmem:[#allocation3] sm:$0xf] %vm734_vm12, %v726_v63 }
 0x18a   : > { %v759_v0 = vpop.permute.xlu1 %758 }
 0x18b   : > { %768 = vst.msk [vmem:[#allocation3] sm:$0xf] %vm767_vm13, %v759_v0 }
 0x18e   : > { %v991_v58 = vpop.permute.xlu1 %990 }
 0x192   : > { %v697_v2 = vpop.permute.xlu0 %696 }
 0x193   : > { %v707_v4 = vsel %vm705_vm15, %v697_v2, %v706_v3  ;;  %vm2126_vm15 = vmand %vm775_vm6, %vm776_vm9  ;;  %vm996_vm6 = vcmask 254080  }
 0x194   : > { %708 = vst [vmem:[#allocation3 + $0x8] sm:$0x1] %v707_v4 }
 0x196   : > { %v730_v5 = vpop.permute.xlu0 %729 }
 0x19a   : > { %v695_v6 = vpop.permute.xlu0 %694 }
 0x19b   : > { %v739_v7 = vld [vmem:[#allocation3 + $0x8] sm:$0x1]  ;;  %703 = vst.msk [vmem:[#allocation3 + $0x4] sm:$0xf] %vm701_vm11, %v695_v6  ;;  %vm997_vm11 = vmand %vm996_vm6, %vm671_vm8 }
 0x19c   : > { %v740_v8 = vsel %vm738_vm4, %v730_v5, %v739_v7 }
 0x19d   : > { %741 = vst [vmem:[#allocation3 + $0x8] sm:$0x1] %v740_v8 }
 0x19e   : > { %v728_v9 = vpop.permute.xlu0 %727 }
 0x19f   : > { %736 = vst.msk [vmem:[#allocation3 + $0x4] sm:$0xf] %vm734_vm12, %v728_v9  ;;  %vm1152_vm12 = vsmask.f32 2304 }
 0x1a0   : > { %vm1167_vm4 = vmand %vm1166_vm3, %vm1152_vm12 }
 0x1a2   : > { %v761_v10 = vpop.permute.xlu0 %760 }
 0x1a3   : > { %769 = vst.msk [vmem:[#allocation3 + $0x4] sm:$0xf] %vm767_vm13, %v761_v10  ;;  %v1565_v10 = vld [vmem:[%s2272_s6] ss:$0 sm:$0xff] }
 0x1a4   : > { %v772_v11 = vld [vmem:[#allocation3 + $0x8] sm:$0x1] }
 0x1a5   : > { %v773_v12 = vsel %vm771_vm7, %v763_v61, %v772_v11  ;;  %vm1172_vm7 = vsmask.f32 7946 }
 0x1a6   : > { %774 = vst [vmem:[#allocation3 + $0x8] sm:$0x1] %v773_v12  ;;  %vm1173_vm9 = vmand %vm1171_vm5, %vm1172_vm7 }
 0x1aa   : > { %v1807_v13 = vld [vmem:[#allocation3] sm:$0xff]  }
 0x1ab   : > { %1703 = vmatprep.mubr.msk.bf16.mxu1 %vm827_vm14, %v1807_v13  ;;  %v804_v17 = vshll.u32 %v1807_v13, 16  ;;  %v802_v20 = vshrl.u32 %v1807_v13, 16 }
 0x1ad   : > { %v778_v15 = vld [vmem:[#allocation3 + $0x8] sm:$0x1]  ;;  %v806_v19 = vrot.slane %v804_v17, 1  ;;  %v1816_v17 = vld [vmem:[%s2273_s7] sm:$0xff]  }
 0x1ae   : > { %v779_v16 = vsel %vm2126_vm15, 0, %v778_v15 }
 0x1af   : > { %780 = vst [vmem:[#allocation3 + $0x8] sm:$0x1] %v779_v16  ;;  %v807_v22 = vor.u32 %v806_v19, %v802_v20  ;;  %v1154_v19 = vld [vmem:[#allocation7] sm:$0x7] }
 0x1b6   : > { %v1810_v18 = vld [vmem:[#allocation3 + $0x8] ss:$0 sps:$4 sm:$0x11]  }
 0x1b7   : > { %1704 = vmatmul.mubr.msk.bf16.vlgmr.msra.gmra.mrb[20].mxu1 %vm827_vm14, %v1810_v18  ;;  %v809_v21 = vshll.u32 %v1810_v18, 16  ;;  %v813_v26 = vshrl.u32 %v1810_v18, 16  ;;  %v1817_v18 = vld [vmem:[%s2273_s7 + $0x8] sm:$0xff]  }
 0x1b8   : > { %1719 = vmatprep.mubr.msk.bf16.mxu1 %vm1890_vm0, %v1889_v1  ;;  %1716 = vmatpush3.bf16.msra.mxu1 %v1811_v45 }
 0x1b9   : > { %v811_v24 = vrot.slane %v809_v21, 1  ;;  %1717 = vmatprep.subr.bf16.mxu1 %v1889_v1 }
 0x1bb   : > { %v812_v25 = vsel %vm395_vm2, %v807_v22, %v811_v24  ;;  %vm974_vm2 = vmand %vm955_vm10, %vm671_vm8  ;;  %vm994_vm10 = vcmask 257152   ;;  %vm1151_vm8 = vcmask 256000  }
 0x1bc   : > { %1695 = vmatprep.mubr.msk.bf16.mxu0 %vm827_vm14, %v812_v25  ;;  %1718 = vmatpush3.bf16.msra.mxu1 %v1812_v48  ;;  %vm1153_vm13 = vmand %vm1151_vm8, %vm1152_vm12  ;;  %v1818_v25 = vld [vmem:[%s2273_s7 + $0x20] sm:$0xff]  }
 0x1bd   : > { %1696 = vmatmul.mubr.msk.bf16.vlgmr.msra.gmra.mrb[20].mxu0 %vm827_vm14, %v813_v26  ;;  %1735 = vmatprep.subr.bf16.mxu1 %v1889_v1  ;;  %v1819_v26 = vld [vmem:[%s2273_s7 + $0x10] sm:$0xff]   ;;  %v1586_v48 = vld [vmem:[%s2274_s8] ss:$0 sm:$0xff] }
 0x1be   : > { %1711 = vmatprep.mubr.msk.bf16.mxu0 %vm1890_vm0, %v1889_v1  ;;  %1708 = vmatpush3.bf16.msra.mxu0 %v1813_v46 }
 0x1bf   : > { %1709 = vmatprep.subr.bf16.mxu0 %v1889_v1 }
 0x1c2   : > { %1710 = vmatpush3.bf16.msra.mxu0 %v1815_v50 }
 0x1c3   : > { %1723 = vmatprep.subr.bf16.mxu0 %v1889_v1 }
 0x1d7   : > { %v522_v27 = vpop.f32.mrb[16].mxu0 }
 0x1d8   : > { %v1667_v28 = vpop.f32.mrb[17].mxu0 }
 0x1d9   : > { %v524_v29 = vpop.f32.mrb[18].mxu0  ;;  %v1820_v28 = vld [vmem:[%s2273_s7 + $0x28] sm:$0xff]  }
 0x1da   : > { %v1668_v30 = vpop.f32.mrb[19].mxu0  ;;  %v1821_v29 = vld [vmem:[%s2273_s7 + $0x18] sm:$0xff]  }
 0x1db   : > { %v1823_v30 = vld [vmem:[%s2273_s7 + $0x30] sm:$0xff]  }
 0x28a   : > { %v1705_v31 = vpop.f32.mrb[20].mxu1 }
 0x28b   : > { %v931_v32 = vpop.f32.mrb[21].mxu1  ;;  %v1824_v31 = vld [vmem:[%s2273_s7 + $0x38] sm:$0xff]  }
 0x28c   : > { %v1706_v33 = vpop.f32.mrb[22].mxu1 }
 0x28d   : > { %v934_v34 = vpop.f32.mrb[23].mxu1 }
 0x290   : > { %v1697_v35 = vpop.f32.mrb[20].mxu0 }
 0x291   : > { %v868_v36 = vpop.f32.mrb[21].mxu0 }
 0x292   : > { %v932_v39 = vadd.f32 %v931_v32, %v868_v36  ;;  %v1698_v37 = vpop.f32.mrb[22].mxu0 }
 0x293   : > { %v871_v40 = vpop.f32.mrb[23].mxu0 }
 0x294   : > { %v951_v41 = vadd.f32 %v1549_v38, %v932_v39  ;;  %v935_v42 = vadd.f32 %v934_v34, %v871_v40 }
 0x296   : > { %v953_v43 = vmax.f32 %v951_v41, 0.0  ;;  %v952_v44 = vadd.f32 %v1549_v38, %v935_v42 }
 0x298   : > { %957 = vst.msk [vmem:[#allocation4 + $0x1] sm:$0xff] %vm440_vm1, %v953_v43  ;;  %v954_v47 = vmax.f32 %v952_v44, 0.0 }
 0x29a   : > { %958 = vst.msk [vmem:[#allocation4 + $0x9] sm:$0xff] %vm440_vm1, %v954_v47  ;;  %vm971_vm1 = vcmask 125952  }
 0x2a1   : > { %v979_v51 = vld [vmem:[#allocation4 + $0x1] ss:$2 sm:$0xff]  ;;  %v962_v52 = vld [vmem:[#allocation4 + $0x10] ss:$2 sm:$0x1] }
 0x2a2   : > { %v1606_v53 = vpack.c.bf16 %v979_v51, %v979_v51  ;;  %v1605_v54 = vpack.c.bf16 %v962_v52, %v962_v52  ;;  %v960_v55 = vld [vmem:[#allocation4] ss:$2 sm:$0xff] }
 0x2a3   : > { %v1604_v56 = vpack.c.bf16 %v960_v55, %v960_v55 }
 0x2a4   : > { %988 = vrot.lane.b32.xlu0 %v1606_v53, %s1893_s27  ;;  %v976_v57 = vsel %vm974_vm2, %v1605_v54, %v975_v49  ;;  %vm1428_vm2 = vcmask 516096  }
 0x2a5   : > { %977 = vst [vmem:[#allocation5 + $0x4] sm:$0x1] %v976_v57  ;;  %972 = vst.msk [vmem:[#allocation5] sm:$0xf] %vm971_vm1, %v1604_v56 }
 0x2ac   : > { %v998_v59 = vld [vmem:[#allocation5 + $0x4] sm:$0x1] }
 0x2ad   : > { %v999_v23 = vsel %vm997_vm11, %v991_v58, %v998_v59 }
 0x2ae   : > { %1000 = vst [vmem:[#allocation5 + $0x4] sm:$0x1] %v999_v23 }
 0x2b5   : > { %v1001_v60 = vld [vmem:[#allocation5 + $0x4] sm:$0x1] }
 0x2b6   : > { %v1002_v61 = vsel %vm2126_vm15, 0, %v1001_v60  ;;  %vm1354_vm15 = vcmask 1044480  }
 0x2b7   : > { %1003 = vst [vmem:[#allocation5 + $0x4] sm:$0x1] %v1002_v61 }
 0x316   : > { %v989_v62 = vpop.permute.xlu0 %988 }
 0x317   : > { %995 = vst.msk [vmem:[#allocation5] sm:$0xf] %vm994_vm10, %v989_v62 }
 0x31e   : > { %v1814_v63 = vld [vmem:[#allocation5] sm:$0x1f]  }
 0x31f   : > { %1720 = vmatmul.mubr.msk.bf16.vlgmr.msra.gmra.mrb[24].mxu1 %vm827_vm14, %v1814_v63  ;;  %v1023_v0 = vshll.u32 %v1814_v63, 16  ;;  %v1021_v2 = vshrl.u32 %v1814_v63, 16 }
 0x320   : > { %1743 = vmatprep.mubr.msk.bf16.mxu1 %vm1890_vm0, %v1889_v1  ;;  %1736 = vmatpush3.bf16.msra.mxu1 %v1816_v17 }
 0x321   : > { %v1025_v3 = vrot.slane %v1023_v0, 1  ;;  %1737 = vmatprep.subr.bf16.mxu1 %v1889_v1 }
 0x323   : > { %v1026_v4 = vor.u32 %v1025_v3, %v1021_v2 }
 0x324   : > { %1738 = vmatpush3.bf16.msra.mxu1 %v1817_v18 }
 0x325   : > { %1712 = vmatmul.mubr.msk.bf16.vlgmr.msra.gmra.mrb[24].mxu0 %vm827_vm14, %v1026_v4  ;;  %1739 = vmatprep.subr.bf16.mxu1 %v1889_v1 }
 0x326   : > { %1731 = vmatprep.mubr.msk.bf16.mxu0 %vm1890_vm0, %v1889_v1  ;;  %1724 = vmatpush3.bf16.msra.mxu0 %v1818_v25 }
 0x327   : > { %1725 = vmatprep.subr.bf16.mxu0 %v1889_v1 }
 0x328   : > { %1740 = vmatpush3.bf16.msra.mxu1 %v1819_v26 }
 0x329   : > { %1741 = vmatprep.subr.bf16.mxu1 %v1889_v1 }
 0x32a   : > { %1726 = vmatpush3.bf16.msra.mxu0 %v1820_v28 }
 0x32b   : > { %1727 = vmatprep.subr.bf16.mxu0 %v1889_v1 }
 0x32c   : > { %1742 = vmatpush3.bf16.msra.mxu1 %v1821_v29 }
 0x32e   : > { %1728 = vmatpush3.bf16.msra.mxu0 %v1823_v30 }
 0x32f   : > { %1729 = vmatprep.subr.bf16.mxu0 %v1889_v1 }
 0x332   : > { %1730 = vmatpush3.bf16.msra.mxu0 %v1824_v31 }
 0x333   : > { %1747 = vmatprep.subr.mxu0 %v1889_v1 }
 0x3f2   : > { %v1130_v5 = vpop.f32.mrb[24].mxu1 }
 0x3f3   : > { %v1721_v6 = vpop.f32.mrb[25].mxu1 }
 0x3f4   : > { %v1133_v7 = vpop.f32.mrb[26].mxu1 }
 0x3f5   : > { %v1722_v8 = vpop.f32.mrb[27].mxu1 }
 0x3f8   : > { %v1076_v9 = vpop.f32.mrb[24].mxu0 }
 0x3f9   : > { %v1131_v11 = vadd.f32 %v1130_v5, %v1076_v9  ;;  %v1713_v12 = vpop.f32.mrb[25].mxu0 }
 0x3fa   : > { %v1079_v13 = vpop.f32.mrb[26].mxu0 }
 0x3fb   : > { %v1143_v14 = vadd.f32 %v1565_v10, %v1131_v11  ;;  %v1714_v15 = vpop.f32.mrb[27].mxu0 }
 0x3fd   : > { %v1144_v16 = vmax.f32 %v1143_v14, 0.0 }
 0x3ff   : > { %1147 = vst.msk [vmem:[#allocation6 + $0x1] sm:$0xff] %vm827_vm14, %v1144_v16  ;;  %vm1229_vm14 = vcmask 523264  }
 0x406   : > { %v1158_v20 = vld [vmem:[#allocation6 + $0x1] ss:$2 sm:$0x1f]  ;;  %v1149_v21 = vld [vmem:[#allocation6] ss:$2 sm:$0x1f] }
 0x407   : > { %v1608_v22 = vpack.c.bf16 %v1158_v20, %v1158_v20  ;;  %v1150_v24 = vpack.c.bf16 %v1149_v21, %v1149_v21 }
 0x409   : > { %1163 = vrot.lane.b32.xlu1 %v1608_v22, %s1894_s25  ;;  %v1155_v27 = vsel %vm1153_vm13, %v1150_v24, %v1154_v19  ;;  %s1829_s25 = sshll.u32 %s1895_s17, 4  ;;  %s1830_s25 = int_to_ptr.vmem [resolvable:$false] %s1829_s25 }
 0x40a   : > { %1156 = vst [vmem:[#allocation7] sm:$0x7] %v1155_v27  ;;  %s1831_s27 = scalar_lea.vmem %s1830_s25, 32  ;;  %p1832_p0 = scmp.lt.s32.totalorder %s2226_s29, %s1830_s25 }
 0x40b   : > { %p1833_p1 = scmp.lt.s32.totalorder %s1831_s27, %s1825_s21 }
 0x40d   : > { %p1834_p2 = por %p1833_p1, %p1832_p0 }
 0x40f   : > { %p1835_p3 = pnand %p1834_p2, %p1828_p13 }
 0x411   : > { %v1168_v33 = vld [vmem:[#allocation7] sm:$0x7] }
 0x47b   : > { %v1164_v32 = vpop.permute.xlu1 %1163 }
 0x47c   : > { %v1169_v34 = vsel %vm1167_vm4, %v1164_v32, %v1168_v33 }
 0x47d   : > { %1170 = vst [vmem:[#allocation7] sm:$0x7] %v1169_v34 }
 0x484   : > { %v1174_v35 = vld [vmem:[#allocation7] sm:$0x4] }
 0x485   : > { %v1175_v36 = vsel %vm1173_vm9, 0, %v1174_v35 }
 0x486   : > { %1176 = vst [vmem:[#allocation7] sm:$0x4] %v1175_v36 }
 0x48d   : > { %v1177_v38 = vld [vmem:[#allocation7] sm:$0x7] }
 0x48e   : > { %v1575_v39 = vcombine.low %v1177_v38, %v1177_v38  ;;  %1744 = vmatmul.mubr.msk.bf16.vlgmr.msra.gmra.mrb[28].mxu1 %vm1229_vm14, %v1177_v38 }
 0x490   : > { %v1201_v37 = vshll.u32 %v1575_v39, 16  ;;  %v1199_v40 = vshrl.u32 %v1575_v39, 16 }
 0x492   : > { %v1203_v41 = vrot.slane %v1201_v37, 1 }
 0x494   : > { %v1204_v42 = vor.u32 %v1203_v41, %v1199_v40 }
 0x496   : > { %1732 = vmatmul.mubr.msk.bf16.vlgmr.msra.gmra.mrb[28].mxu0 %vm1229_vm14, %v1204_v42 }
 0x497   : > { %1749 = vmatprep.mubr.msk.f32.mxu0 %vm1890_vm0, %v1889_v1  ;;  %v1349_v1 = vld [vmem:[%s2275_s9] sm:$0x1]  ;;  %vm1350_vm0 = vcmask 39936  }
 0x561   : > { %v1334_v43 = vpop.f32.mrb[28].mxu1 }
 0x562   : > { %v1745_v44 = vpop.f32.mrb[29].mxu1 }
 0x563   : > { %v1337_v45 = vpop.f32.mrb[30].mxu1 }
 0x564   : > { %v1746_v46 = vpop.f32.mrb[31].mxu1 }
 0x569   : > { %v1267_v47 = vpop.f32.mrb[28].mxu0 }
 0x56a   : > { %v1335_v49 = vadd.f32 %v1334_v43, %v1267_v47  ;;  %v1733_v50 = vpop.f32.mrb[29].mxu0 }
 0x56b   : > { %v1270_v51 = vpop.f32.mrb[30].mxu0 }
 0x56c   : > { %v1347_v52 = vadd.f32 %v1586_v48, %v1335_v49  ;;  %v1734_v53 = vpop.f32.mrb[31].mxu0 }
 0x56e   : > { %v1348_v54 = vmax.f32 %v1347_v52, 0.0 }
 0x570   : > { %1748 = vmatpush3.msk.msra.mxu0 %vm1354_vm15, %v1348_v54 }
 0x571   : > { %1750 = vmatmul.mubr.msk.f32.vlgmr.msra.gmra.mrb[32].mxu0 %vm1350_vm0, %v1349_v1 }
 0x644   : > { %v1424_v55 = vpop.f32.mrb[32].mxu0 }
 0x645   : > { %1429 = vst.msk [vmem:[%s351_s28] sm:$0x1] %vm1428_vm2, %v1424_v55  ;;  %v1751_v56 = vpop.f32.mrb[33].mxu0 }
 0x646   : > { %1838 = shalt.err (!%p1835_p3)
}
 0x647   : > { %s1839_s20 = scalar_lea.hbm %s2224_s12, 16  ;;  %s1843_s30 = scalar_lea.hbm %s2276_s10, 32 }
 0x648   : > { %p1840_p4 = scmp.ne.s32.totalorder %s2224_s12, %s1839_s20  ;;  %p1844_p9 = scmp.lt.u32.totalorder %s2224_s12, %s2276_s10 }
 0x649   : > { %p1845_p10 = scmp.lt.u32.totalorder %s1843_s30, %s1839_s20  ;;  %p1847_p12 = scmp.lt.u32.totalorder %s1839_s20, %s2224_s12 }
 0x64a   : > { %p1841_p7 = pnand %p1840_p4, %p1989_p5 }
 0x64b   : > { %p1846_p11 = por %p1845_p10, %p1844_p9 }
 0x64c   : > { %p1842_p8 = pneg %p1841_p7 }
 0x64d   : > { %p1848_p13 = por %p1847_p12, %p1846_p11 }
 0x64f   : > { %p1849_p0 = pnand %p1848_p13, %p1842_p8 }
 0x651   : > { %1852 = shalt.err (!%p1849_p0)
}
 0x652   : > { %1753 = dma.vmem_to_hbm [thread:$0]  (%p1989_p5), %s2226_s29, 16, %s2224_s12, %s1431_s18  }
 0x653 PF: > { %p1759_p1 = scmp.ge.s32.totalorder %s1887_s16, 2  ;;  %s1455_s21 = sand.u32 1, %s1875_s13  }
 0x654   : > { %s1456_s25 = scalar_lea.sflag [#allocation9], %s1455_s21 }
 0x655   : > { %p1756_p2 = pnand %p1759_p1, %p1993_p6 }
 0x657   : > { %1870 = dma.done.wait (!%p1756_p2), %s1456_s25, 16  }
 0x658   : > { %1872 = vsyncadd (!%p1756_p2), %s1456_s25, 4294967280  ;;  %p20_p3 = scmp.ge.s32.totalorder %s1976_s19, 4   ;;  %s2281_s13 = smov %s1879_s14 }
 0x659   : > { %s2282_s14 = smov %s1883_s15  ;;  %s2283_s15 = smov %s1987_s22 }
 0x65a   : > { %s2284_s16 = smov %s1976_s19  ;;  %22 = sbr.rel (!%p20_p3) target bundleno = 3 (0x3), region = 114 }
 0x661   :  { %1460 = vsyncpa [#allocation9], 1 }
 0x662   :  { %1462 = vsyncpa [#allocation9 + $0x1], 1 }

</bundles_post_ra>
